<compile_context>
chip_gen: v6e
topology: v6e:2x2x1
jax: 0.10.0
libtpu: 0.0.40
codegen_flags: <defaults>
</compile_context>

<pallas_src>
import math

import jax
import jax.numpy as jnp
from jax import lax
from jax.experimental import pallas as pl
from jax.experimental.pallas import tpu as pltpu


def vpg_policy_kernel(x_ref, w1T_ref, b1T_ref, w2T_ref, b2T_ref, whT_ref,
                      bhT_ref, out_ref):
    """Fused 2-layer tanh MLP + linear head, lane-dense activations.

    The x tile is (tile_b, obs_dim) f32; every activation is
    [features, tile_b] so the 128-wide lane axis carries batch rows:
        h1       = tanh(W1^T @ x^T + b1)      (H, tile_b)
        h2       = tanh(W2^T @ h1  + b2)      (H, tile_b)
        logits^T = Wh^T @ h2 + bh             (A_pad, tile_b)
    All matmuls are f32-in / f32-accumulate on the MXU.
    """
    x = x_ref[...]                                     # (tile_b, obs_dim) f32
    # Contract obs_dim of both operands (A @ B^T form): keeps the output
    # lane-dense without transposing / copying x in the wrapper.
    h1 = lax.dot_general(w1T_ref[...], x, (((1,), (1,)), ((), ())),
                         preferred_element_type=jnp.float32)       # (H, tile_b)
    h1 = jnp.tanh(h1 + b1T_ref[...])                   # f32 bias + tanh (EUP)
    h2 = jnp.dot(w2T_ref[...], h1, preferred_element_type=jnp.float32)
    h2 = jnp.tanh(h2 + b2T_ref[...])
    logits = jnp.dot(whT_ref[...], h2, preferred_element_type=jnp.float32)
    out_ref[...] = logits + bhT_ref[...]               # (A_pad, tile_b) f32


def _round_up(x, m):
    return pl.cdiv(x, m) * m


def _tensorcores_per_chip():
    """2 TensorCores per chip on v7x, 1 on v5e/v6e.  Defensive default: 1."""
    try:
        kind = jax.devices()[0].device_kind.lower()
    except Exception:
        return 1
    return 2 if "v7" in kind else 1


def _pick_tile_b(batch, n_cores):
    """Batch rows ride the 128-wide lane axis, so tiles are multiples of 128.

    Single-TC chips (v5e/v6e): the grid is a serial loop, so collapse to one
    step whenever the 512 cap allows -- each extra grid step is pure pipeline
    overhead.  Multi-TC (v7x): keep >= n_cores balanced steps so the
    "parallel" batch axis shards across both TensorCores.  The 512 cap keeps
    the two (H, tile_b) f32 intermediates and their tanh/dot chain inside the
    64-entry vreg file (tile_b=1024 starts spilling, which hurts most on
    v5e's single vector-store slot).  VMEM is never the constraint here.
    """
    max_tile = 512
    b128 = _round_up(batch, 128)
    if n_cores > 1 and b128 > 128:
        per_core = _round_up(pl.cdiv(b128, n_cores), 128)
        return min(per_core, max_tile)
    return min(b128, max_tile)


def prepare_params(params):
    """One-time (per params update) preprocessing; cache and reuse.

    Returns (w1T, b1T, w2T, b2T, whT, bhT) with weights transposed to
    (out, in), the head zero-padded to 8 sublane-aligned rows (unmasked
    output store) and biases reshaped to column vectors.  Keeping this out
    of the per-call path removes ~6 XLA ops + their HBM round trips from
    every forward call.
    """
    (w1, b1), (w2, b2), (wh, bh) = params
    H = w1.shape[1]
    A = wh.shape[1]
    A_pad = _round_up(A, 8)
    f32 = jnp.float32
    w1T = jnp.asarray(w1, f32).T                                   # (H, obs)
    w2T = jnp.asarray(w2, f32).T                                   # (H, H)
    whT = jnp.zeros((A_pad, H), f32).at[:A, :].set(jnp.asarray(wh, f32).T)
    b1T = jnp.asarray(b1, f32).reshape(H, 1)
    b2T = jnp.asarray(b2, f32).reshape(H, 1)
    bhT = jnp.zeros((A_pad, 1), f32).at[:A, :].set(
        jnp.asarray(bh, f32).reshape(A, 1))
    return (w1T, b1T, w2T, b2T, whT, bhT)


def vpg_policy_logits_lane_dense(x, prep, *, tile_b=None):
    """Hot path: returns logits^T as a lane-dense (A_pad, B_pad) f32 slab.

    Rows >= action_n and columns >= batch are padding (zero head rows /
    padded tail-block batch columns); consumers should index [:A, :B] or
    reduce over the first (sublane) axis directly -- do NOT round-trip
    through a [batch, A] transpose unless required.
    """
    w1T, b1T, w2T, b2T, whT, bhT = prep
    B, obs_dim = x.shape
    H = w1T.shape[0]
    A_pad = whT.shape[0]

    if tile_b is None:
        tile_b = _pick_tile_b(B, _tensorcores_per_chip())
    assert tile_b % 128 == 0, "batch tile must be lane-aligned (multiple of 128)"

    grid_b = pl.cdiv(B, tile_b)
    B_pad = grid_b * tile_b          # output padded; input tail block is
                                     # handled by Pallas' padded-block reads.

    # Constant-index operands: fetched once, single-buffered.
    const = lambda shape: pl.BlockSpec(shape, lambda i: (0, 0),
                                       pipeline_mode=pl.Buffered(1))

    cost = pl.CostEstimate(
        flops=int(2 * B_pad * (obs_dim * H + H * H + H * A_pad)),
        transcendentals=int(2 * B_pad * H),                 # two tanh layers
        bytes_accessed=int(B * obs_dim * 4 + A_pad * B_pad * 4 +
                           4 * sum(int(a.size) for a in prep)),
    )

    return pl.pallas_call(
        vpg_policy_kernel,
        out_shape=jax.ShapeDtypeStruct((A_pad, B_pad), jnp.float32),
        grid_spec=pltpu.PrefetchScalarGridSpec(
            num_scalar_prefetch=0,
            grid=(grid_b,),
            in_specs=[
                pl.BlockSpec((tile_b, obs_dim), lambda i: (i, 0)),  # x tile
                const((H, obs_dim)), const((H, 1)),                 # layer 1
                const((H, H)),       const((H, 1)),                 # layer 2
                const((A_pad, H)),   const((A_pad, 1)),             # head (padded)
            ],
            out_specs=pl.BlockSpec((A_pad, tile_b), lambda i: (0, i)),
        ),
        compiler_params=pltpu.CompilerParams(
            dimension_semantics=("parallel",)),
        cost_estimate=cost,
    )(x, w1T, b1T, w2T, b2T, whT, bhT)


def vpg_categorical_policy_mlp(x, params, *, prep=None, tile_b=None):
    """Module-compatible forward: logits [batch, action_n] f32.

    Pass a cached `prep = prepare_params(params)` in hot loops.  Note the
    final [:A, :B].T materializes an extra HBM pass over the logits; prefer
    consuming vpg_policy_logits_lane_dense() output directly when the next
    op is softmax / log-prob / categorical sampling.
    """
    if prep is None:
        prep = prepare_params(params)
    A = params[-1][0].shape[1]
    B = x.shape[0]
    outT = vpg_policy_logits_lane_dense(x.astype(jnp.float32), prep,
                                        tile_b=tile_b)
    return outT[:A, :B].T


def init_linear(key, fan_in, fan_out):
    """PyTorch nn.Linear default init: U(-1/sqrt(fan_in), 1/sqrt(fan_in))."""
    kw, kb = jax.random.split(key)
    bound = 1.0 / math.sqrt(fan_in)
    w = jax.random.uniform(kw, (fan_in, fan_out), jnp.float32, -bound, bound)
    b = jax.random.uniform(kb, (1, fan_out), jnp.float32, -bound, bound)
    return w, b


def reference_forward(x, params):
    """Pure-f32 reference (matches the torch module math)."""
    (w1, b1), (w2, b2), (wh, bh) = params
    h = jnp.tanh(x @ w1 + b1)
    h = jnp.tanh(h @ w2 + b2)
    return h @ wh + bh


if __name__ == "__main__":
    # Box obs of dim 4, 2 trunk layers of size 32 with tanh, Discrete(6)
    # action space.  Batch of 200 is deliberately NOT a multiple of 128 to
    # exercise the padded tail-block path (no wrapper-side padding of x).
    obs_dim = 4
    layer_size = 32
    num_actions = 6
    batch = 200

    key = jax.random.PRNGKey(0)
    kx, k1, k2, k3 = jax.random.split(key, 4)

    x = jax.random.normal(kx, (batch, obs_dim), dtype=jnp.float32)
    params = [
        init_linear(k1, obs_dim, layer_size),      # trunk layer 1 (tanh)
        init_linear(k2, layer_size, layer_size),   # trunk layer 2 (tanh)
        init_linear(k3, layer_size, num_actions),  # categorical head (no act)
    ]

    # One-time preprocessing; reuse across every forward call / rollout step.
    prep = prepare_params(params)

    # Hot path: lane-dense logits^T (A_pad, B_pad); no transpose pass.
    logitsT = jax.block_until_ready(vpg_policy_logits_lane_dense(x, prep))
    assert logitsT.shape[0] >= num_actions and logitsT.shape[1] >= batch

    # Module-compatible forward: [batch, action_n].
    logits = jax.block_until_ready(
        vpg_categorical_policy_mlp(x, params, prep=prep))
    assert logits.shape == (batch, num_actions)

    # Matches the f32 reference (MXU matmul rounding is the only delta).
    ref = reference_forward(x, params)
    max_err = float(jnp.max(jnp.abs(logits - ref)))
    assert jnp.allclose(logits, ref, atol=5e-2, rtol=5e-2), max_err

    # Lane-dense slab and compatibility path agree exactly.
    assert jnp.allclose(logitsT[:num_actions, :batch].T, logits), \
        "lane-dense / compat layout mismatch"

    print("KERNEL_OK")
</pallas_src>

<mosaic_0001>
module attributes {stable_mosaic.version = 11 : i64} {
  func.func @vpg_policy_kernel(%arg0: i32, %arg1: memref<256x4xf32, #tpu.memory_space<vmem>>, %arg2: memref<32x4xf32, #tpu.memory_space<vmem>>, %arg3: memref<32x1xf32, #tpu.memory_space<vmem>>, %arg4: memref<32x32xf32, #tpu.memory_space<vmem>>, %arg5: memref<32x1xf32, #tpu.memory_space<vmem>>, %arg6: memref<8x32xf32, #tpu.memory_space<vmem>>, %arg7: memref<8x1xf32, #tpu.memory_space<vmem>>, %arg8: memref<8x256xf32, #tpu.memory_space<vmem>>) attributes {dimension_semantics = [#tpu.dimension_semantics<parallel>], iteration_bounds = array<i64: 1>, scalar_prefetch = 0 : i64, scratch_operands = 0 : i64, tpu.core_type = #tpu.core_type<tc>, window_params = [{transform_indices = @transform_0, window_bounds = array<i64: 256, 4>}, {pipeline_mode = #tpu.pipeline_mode<synchronous>, transform_indices = @transform_1, window_bounds = array<i64: 32, 4>}, {pipeline_mode = #tpu.pipeline_mode<synchronous>, transform_indices = @transform_2, window_bounds = array<i64: 32, 1>}, {pipeline_mode = #tpu.pipeline_mode<synchronous>, transform_indices = @transform_3, window_bounds = array<i64: 32, 32>}, {pipeline_mode = #tpu.pipeline_mode<synchronous>, transform_indices = @transform_4, window_bounds = array<i64: 32, 1>}, {pipeline_mode = #tpu.pipeline_mode<synchronous>, transform_indices = @transform_5, window_bounds = array<i64: 8, 32>}, {pipeline_mode = #tpu.pipeline_mode<synchronous>, transform_indices = @transform_6, window_bounds = array<i64: 8, 1>}, {transform_indices = @transform_7, window_bounds = array<i64: 8, 256>}]} {
    %c0 = arith.constant 0 : index
    %c0_0 = arith.constant 0 : index
    %0 = vector.load %arg1[%c0, %c0_0] : memref<256x4xf32, #tpu.memory_space<vmem>>, vector<256x4xf32>
    %c0_1 = arith.constant 0 : index
    %c0_2 = arith.constant 0 : index
    %1 = vector.load %arg2[%c0_1, %c0_2] : memref<32x4xf32, #tpu.memory_space<vmem>>, vector<32x4xf32>
    %cst = arith.constant dense<0.000000e+00> : vector<32x256xf32>
    %2 = tpu.matmul %1, %0, %cst {dimension_numbers = #tpu.dot_dimension_numbers<[1], [1], [0], [0], [0, 0, 1, 0], [], []>} : vector<32x4xf32>, vector<256x4xf32>, vector<32x256xf32> -> vector<32x256xf32>
    %c0_3 = arith.constant 0 : index
    %c0_4 = arith.constant 0 : index
    %3 = vector.load %arg3[%c0_3, %c0_4] : memref<32x1xf32, #tpu.memory_space<vmem>>, vector<32x1xf32>
    %4 = vector.broadcast %3 : vector<32x1xf32> to vector<32x256xf32>
    %5 = arith.addf %2, %4 : vector<32x256xf32>
    %6 = math.tanh %5 : vector<32x256xf32>
    %c0_5 = arith.constant 0 : index
    %c0_6 = arith.constant 0 : index
    %7 = vector.load %arg4[%c0_5, %c0_6] : memref<32x32xf32, #tpu.memory_space<vmem>>, vector<32x32xf32>
    %cst_7 = arith.constant dense<0.000000e+00> : vector<32x256xf32>
    %8 = tpu.matmul %7, %6, %cst_7 {dimension_numbers = #tpu.dot_dimension_numbers<[1], [0], [0], [1], [0, 0, 1, 1], [], []>} : vector<32x32xf32>, vector<32x256xf32>, vector<32x256xf32> -> vector<32x256xf32>
    %c0_8 = arith.constant 0 : index
    %c0_9 = arith.constant 0 : index
    %9 = vector.load %arg5[%c0_8, %c0_9] : memref<32x1xf32, #tpu.memory_space<vmem>>, vector<32x1xf32>
    %10 = vector.broadcast %9 : vector<32x1xf32> to vector<32x256xf32>
    %11 = arith.addf %8, %10 : vector<32x256xf32>
    %12 = math.tanh %11 : vector<32x256xf32>
    %c0_10 = arith.constant 0 : index
    %c0_11 = arith.constant 0 : index
    %13 = vector.load %arg6[%c0_10, %c0_11] : memref<8x32xf32, #tpu.memory_space<vmem>>, vector<8x32xf32>
    %cst_12 = arith.constant dense<0.000000e+00> : vector<8x256xf32>
    %14 = tpu.matmul %13, %12, %cst_12 {dimension_numbers = #tpu.dot_dimension_numbers<[1], [0], [0], [1], [0, 0, 1, 1], [], []>} : vector<8x32xf32>, vector<32x256xf32>, vector<8x256xf32> -> vector<8x256xf32>
    %c0_13 = arith.constant 0 : index
    %c0_14 = arith.constant 0 : index
    %15 = vector.load %arg7[%c0_13, %c0_14] : memref<8x1xf32, #tpu.memory_space<vmem>>, vector<8x1xf32>
    %16 = vector.broadcast %15 : vector<8x1xf32> to vector<8x256xf32>
    %17 = arith.addf %14, %16 : vector<8x256xf32>
    %c0_15 = arith.constant 0 : index
    %c0_16 = arith.constant 0 : index
    %18 = vector.load %arg8[%c0_15, %c0_16] : memref<8x256xf32, #tpu.memory_space<vmem>>, vector<8x256xf32>
    tpu.vector_store %arg8[%c0_15, %c0_16], %17 {strides = array<i32>} : memref<8x256xf32, #tpu.memory_space<vmem>>, vector<8x256xf32>,
    return
  }
  func.func @transform_0(%arg0: i32) -> (i32, i32) {
    %c0_i32 = arith.constant 0 : i32
    %c0_i32_0 = arith.constant 0 : i32
    return %arg0, %c0_i32 : i32, i32
  }
  func.func @transform_1(%arg0: i32) -> (i32, i32) {
    %c0_i32 = arith.constant 0 : i32
    %c0_i32_0 = arith.constant 0 : i32
    %c0_i32_1 = arith.constant 0 : i32
    return %c0_i32, %c0_i32_0 : i32, i32
  }
  func.func @transform_2(%arg0: i32) -> (i32, i32) {
    %c0_i32 = arith.constant 0 : i32
    %c0_i32_0 = arith.constant 0 : i32
    %c0_i32_1 = arith.constant 0 : i32
    return %c0_i32, %c0_i32_0 : i32, i32
  }
  func.func @transform_3(%arg0: i32) -> (i32, i32) {
    %c0_i32 = arith.constant 0 : i32
    %c0_i32_0 = arith.constant 0 : i32
    %c0_i32_1 = arith.constant 0 : i32
    return %c0_i32, %c0_i32_0 : i32, i32
  }
  func.func @transform_4(%arg0: i32) -> (i32, i32) {
    %c0_i32 = arith.constant 0 : i32
    %c0_i32_0 = arith.constant 0 : i32
    %c0_i32_1 = arith.constant 0 : i32
    return %c0_i32, %c0_i32_0 : i32, i32
  }
  func.func @transform_5(%arg0: i32) -> (i32, i32) {
    %c0_i32 = arith.constant 0 : i32
    %c0_i32_0 = arith.constant 0 : i32
    %c0_i32_1 = arith.constant 0 : i32
    return %c0_i32, %c0_i32_0 : i32, i32
  }
  func.func @transform_6(%arg0: i32) -> (i32, i32) {
    %c0_i32 = arith.constant 0 : i32
    %c0_i32_0 = arith.constant 0 : i32
    %c0_i32_1 = arith.constant 0 : i32
    return %c0_i32, %c0_i32_0 : i32, i32
  }
  func.func @transform_7(%arg0: i32) -> (i32, i32) {
    %c0_i32 = arith.constant 0 : i32
    %c0_i32_0 = arith.constant 0 : i32
    return %c0_i32, %arg0 : i32, i32
  }
}

</mosaic_0001>

<bundles_post_ra>
// kernel: tpu_custom_call.1
= control target key start
LH: loop header
LB: loop body
LE: loop exit
PB: predicated region body
PF: predicated region fallthrough
CT: control target
= control target key end

     0   :  { %vm87_vm0 = vcmask 31744   ;;  %v668_v3 = vmov 0   ;;  %s913_s0 = inlined_call_operand.vmem [shape: f32[200,4], index: 0, kind: input, shape index: {}]   ;;  %s914_s1 = inlined_call_operand.vmem [shape: f32[32,4], index: 1, kind: input, shape index: {}]   ;;  %s915_s2 = inlined_call_operand.vmem [shape: f32[32,1], index: 2, kind: input, shape index: {}]   ;;  %s916_s3 = inlined_call_operand.vmem [shape: f32[32,32], index: 3, kind: input, shape index: {}]   ;;  %s917_s4 = inlined_call_operand.vmem [shape: f32[32,1], index: 4, kind: input, shape index: {}]   ;;  %s918_s5 = inlined_call_operand.vmem [shape: f32[8,32], index: 5, kind: input, shape index: {}]   ;;  %s919_s6 = inlined_call_operand.vmem [shape: f32[8,1], index: 6, kind: input, shape index: {}]   ;;  %s920_s7 = inlined_call_operand.hbm [shape: f32[8,256], index: 7, kind: output, shape index: {}]  }
   0x1   :  { %v58_v0 = vld [vmem:[%s913_s0 + $0xf8] sm:$0xff]  ;;  %v57_v2 = vld [vmem:[%s913_s0 + $0xf0] sm:$0xff]  ;;  %613 = vset.pattern.permute.xlu1 %v668_v3  ;;  %612 = vset.pattern.permute.xlu0 %v668_v3  ;;  %v56_v5 = vld [vmem:[%s913_s0 + $0xe8] sm:$0xff] }
   0x2   :  { %v42_v1 = vld [vmem:[%s913_s0 + $0x78] sm:$0xff]  ;;  %569 = vmatprep.subr.msk.mxu0 %vm87_vm0, %v58_v0  ;;  %v41_v4 = vld [vmem:[%s913_s0 + $0x70] sm:$0xff]  ;;  %v40_v6 = vld [vmem:[%s913_s0 + $0x68] sm:$0xff] }
   0x3   :  { %570 = vmatpush3.xpose.msk.msra.mxu0 %vm87_vm0, %v42_v1  ;;  %v55_v7 = vld [vmem:[%s913_s0 + $0xe0] sm:$0xff]  ;;  %v54_v10 = vld [vmem:[%s913_s0 + $0xd8] sm:$0xff]  ;;  %v64_v12 = vld [vmem:[%s915_s2 + $0x8] sm:$0xff] }
   0x4   :  { %571 = vmatprep.subr.msk.mxu0 %vm87_vm0, %v57_v2  ;;  %v741_v8 = vld [vmem:[%s914_s1] sm:$0xff]  ;;  %v66_v11 = vld [vmem:[%s915_s2 + $0x18] sm:$0xff]  ;;  %74 = vperm.xlu1 %613, %v64_v12   ;;  %v65_v13 = vld [vmem:[%s915_s2 + $0x10] sm:$0xff] }
   0x5   :  { %v39_v9 = vld [vmem:[%s913_s0 + $0x60] sm:$0xff]  ;;  %601 = vmatprep.mubr.msk.f32.mxu0 %vm87_vm0, %v741_v8  ;;  %84 = vperm.xlu0 %612, %v66_v11   ;;  %v38_v15 = vld [vmem:[%s913_s0 + $0x58] sm:$0xff] }
   0x6   :  { %v63_v14 = vld [vmem:[%s915_s2] sm:$0xff] }
   0x7   :  { %572 = vmatpush3.xpose.msk.msra.mxu0 %vm87_vm0, %v41_v4 }
   0x8   :  { %573 = vmatprep.subr.msk.mxu0 %vm87_vm0, %v56_v5 }
   0xb   :  { %574 = vmatpush3.xpose.msk.msra.mxu0 %vm87_vm0, %v40_v6 }
   0xc   :  { %575 = vmatprep.subr.msk.mxu0 %vm87_vm0, %v55_v7 }
   0xf   :  { %576 = vmatpush3.xpose.msk.msra.mxu0 %vm87_vm0, %v39_v9 }
  0x10   :  { %577 = vmatprep.subr.msk.mxu0 %vm87_vm0, %v54_v10 }
  0x11   :  { %12 = vsyncpa [#allocation3], 0  ;;  %v53_v16 = vld [vmem:[%s913_s0 + $0xd0] sm:$0xff]  ;;  %79 = vperm.xlu0 %612, %v65_v13   ;;  %69 = vperm.xlu1 %613, %v63_v14   ;;  %v300_v17 = vld [vmem:[%s917_s4 + $0x18] sm:$0xff]  ;;  %v669_v46 = vmov 0.0   ;;  %vm321_vm1 = vcmask 261120  }
  0x12   :  { %v299_v18 = vld [vmem:[%s917_s4 + $0x10] sm:$0xff]  ;;  %v52_v20 = vld [vmem:[%s913_s0 + $0xc8] sm:$0xff]  ;;  %v297_v22 = vld [vmem:[%s917_s4] sm:$0xff]  ;;  %398 = vmatprep.mubr.f32.mxu1 %v669_v46  ;;  %s670_s22 = smov [#allocation2]  }
  0x13   :  { %578 = vmatpush3.xpose.msk.msra.mxu0 %vm87_vm0, %v38_v15  ;;  %v37_v19 = vld [vmem:[%s913_s0 + $0x50] sm:$0xff]  ;;  %v298_v21 = vld [vmem:[%s917_s4 + $0x8] sm:$0xff]  ;;  %v51_v24 = vld [vmem:[%s913_s0 + $0xc0] sm:$0xff]  ;;  %s520_s23 = sshll.u32 %s670_s22, 4  ;;  %s521_s23 = int_to_ptr.vmem [resolvable:$true] %s520_s23 }
  0x14   :  { %579 = vmatprep.subr.msk.mxu0 %vm87_vm0, %v53_v16  ;;  %v36_v23 = vld [vmem:[%s913_s0 + $0x48] sm:$0xff]  ;;  %v432_v25 = vld [vmem:[%s919_s6] sm:$0xff]  ;;  %v50_v27 = vld [vmem:[%s913_s0 + $0xb8] sm:$0xff]  ;;  %s646_s24 = scalar_lea.vmem %s521_s23, 256  ;;  %p651_p1 = scmp.lt.s32.totalorder %s521_s23, %s521_s23 }
  0x15   :  { %318 = vperm.xlu0 %612, %v300_v17   ;;  %313 = vperm.xlu1 %613, %v299_v18   ;;  %v35_v26 = vld [vmem:[%s913_s0 + $0x40] sm:$0xff]  ;;  %v34_v28 = vld [vmem:[%s913_s0 + $0x38] sm:$0xff]  ;;  %v49_v29 = vld [vmem:[%s913_s0 + $0xb0] sm:$0xff]  ;;  %p647_p0 = scmp.ne.s32.totalorder %s521_s23, %s646_s24  ;;  %p652_p2 = scmp.lt.s32.totalorder %s646_s24, %s646_s24 }
  0x16   :  { %v33_v30 = vld [vmem:[%s913_s0 + $0x30] sm:$0xff]  ;;  %v48_v31 = vld [vmem:[%s913_s0 + $0xa8] sm:$0xff]  ;;  %v47_v33 = vld [vmem:[%s913_s0 + $0xa0] sm:$0xff] }
  0x17   :  { %580 = vmatpush3.xpose.msk.msra.mxu0 %vm87_vm0, %v37_v19  ;;  %v32_v32 = vld [vmem:[%s913_s0 + $0x28] sm:$0xff]  ;;  %v31_v34 = vld [vmem:[%s913_s0 + $0x20] sm:$0xff]  ;;  %v46_v35 = vld [vmem:[%s913_s0 + $0x98] sm:$0xff]  ;;  %p653_p3 = por %p652_p2, %p651_p1 }
  0x18   :  { %581 = vmatprep.subr.msk.mxu0 %vm87_vm0, %v52_v20  ;;  %v30_v36 = vld [vmem:[%s913_s0 + $0x18] sm:$0xff]  ;;  %v45_v37 = vld [vmem:[%s913_s0 + $0x90] sm:$0xff]  ;;  %v44_v39 = vld [vmem:[%s913_s0 + $0x88] sm:$0xff] }
  0x19   :  { %308 = vperm.xlu0 %612, %v298_v21   ;;  %303 = vperm.xlu1 %613, %v297_v22   ;;  %v29_v38 = vld [vmem:[%s913_s0 + $0x10] sm:$0xff]  ;;  %v28_v40 = vld [vmem:[%s913_s0 + $0x8] sm:$0xff]  ;;  %v43_v41 = vld [vmem:[%s913_s0 + $0x80] sm:$0xff]  ;;  %p654_p4 = pnand %p653_p3, %p647_p0 }
  0x1a   :  { %v27_v42 = vld [vmem:[%s913_s0] sm:$0xff]  ;;  %v60_v43 = vld [vmem:[%s914_s1 + $0x8] sm:$0xff]  ;;  %v61_v44 = vld [vmem:[%s914_s1 + $0x10] sm:$0xff] }
  0x1b   :  { %582 = vmatpush3.xpose.msk.msra.mxu0 %vm87_vm0, %v36_v23  ;;  %v62_v45 = vld [vmem:[%s914_s1 + $0x18] sm:$0xff]  ;;  %v293_v10 = vld [vmem:[%s916_s3] sm:$0xff]  ;;  %v294_v12 = vld [vmem:[%s916_s3 + $0x8] sm:$0xff] }
  0x1c   :  { %583 = vmatprep.subr.msk.mxu0 %vm87_vm0, %v51_v24  ;;  %v295_v13 = vld [vmem:[%s916_s3 + $0x10] sm:$0xff]  ;;  %v296_v14 = vld [vmem:[%s916_s3 + $0x18] sm:$0xff] }
  0x1d   :  { %435 = vperm.xlu0 %612, %v432_v25  }
  0x1f   :  { %584 = vmatpush3.xpose.msk.msra.mxu0 %vm87_vm0, %v35_v26 }
  0x20   :  { %585 = vmatprep.subr.msk.mxu0 %vm87_vm0, %v50_v27 }
  0x23   :  { %586 = vmatpush3.xpose.msk.msra.mxu0 %vm87_vm0, %v34_v28 }
  0x24   :  { %587 = vmatprep.subr.msk.mxu0 %vm87_vm0, %v49_v29 }
  0x27   :  { %588 = vmatpush3.xpose.msk.msra.mxu0 %vm87_vm0, %v33_v30 }
  0x28   :  { %589 = vmatprep.subr.msk.mxu0 %vm87_vm0, %v48_v31 }
  0x2b   :  { %590 = vmatpush3.xpose.msk.msra.mxu0 %vm87_vm0, %v32_v32 }
  0x2c   :  { %591 = vmatprep.subr.msk.mxu0 %vm87_vm0, %v47_v33 }
  0x2f   :  { %592 = vmatpush3.xpose.msk.msra.mxu0 %vm87_vm0, %v31_v34 }
  0x30   :  { %593 = vmatprep.subr.msk.mxu0 %vm87_vm0, %v46_v35 }
  0x33   :  { %594 = vmatpush3.xpose.msk.msra.mxu0 %vm87_vm0, %v30_v36 }
  0x34   :  { %595 = vmatprep.subr.msk.mxu0 %vm87_vm0, %v45_v37 }
  0x37   :  { %596 = vmatpush3.xpose.msk.msra.mxu0 %vm87_vm0, %v29_v38 }
  0x38   :  { %597 = vmatprep.subr.msk.mxu0 %vm87_vm0, %v44_v39 }
  0x3b   :  { %598 = vmatpush3.xpose.msk.msra.mxu0 %vm87_vm0, %v28_v40 }
  0x3c   :  { %599 = vmatprep.subr.msk.mxu0 %vm87_vm0, %v43_v41 }
  0x3f   :  { %600 = vmatpush3.xpose.msk.msra.mxu0 %vm87_vm0, %v27_v42  ;;  %v431_v42 = vld [vmem:[%s918_s5] sm:$0xff] }
  0x42   :  { %602 = vmatmul.mubr.msk.f32.vlgmr.msra.gmra.mxu0 %vm87_vm0, %v741_v8 }
  0x43   :  { %603 = vmatprep.mubr.msk.f32.mxu0 %vm87_vm0, %v60_v43 }
  0x46   :  { %604 = vmatmul.mubr.msk.f32.gmra.mxu0 %vm87_vm0, %v60_v43 }
  0x47   :  { %605 = vmatprep.mubr.msk.f32.mxu0 %vm87_vm0, %v61_v44 }
  0x4a   :  { %606 = vmatmul.mubr.msk.f32.gmra.mxu0 %vm87_vm0, %v61_v44 }
  0x4b   :  { %607 = vmatprep.mubr.msk.f32.mxu0 %vm87_vm0, %v62_v45 }
  0x4e   :  { %608 = vmatmul.mubr.msk.f32.gmra.mxu0 %vm87_vm0, %v62_v45 }
  0x7f   :  { %v75_v54 = vpop.permute.xlu1 %74 }
  0x80   :  { %v85_v51 = vpop.permute.xlu0 %84 }
  0x8c   :  { %v80_v56 = vpop.permute.xlu0 %79  ;;  %v70_v62 = vpop.permute.xlu1 %69 }
  0x90   :  { %v319_v20 = vpop.permute.xlu0 %318  ;;  %v314_v22 = vpop.permute.xlu1 %313 }
  0x94   :  { %v309_v28 = vpop.permute.xlu0 %308  ;;  %v304_v31 = vpop.permute.xlu1 %303 }
  0x98   :  { %v436_v44 = vpop.permute.xlu0 %435 }
 0x102   :  { %v262_v47 = vpop.f32.mrf.mxu0 }
 0x103   :  { %v263_v2 = vadd.f32 %v262_v47, %v70_v62 }
 0x104   :  { %v264_v48 = vpop.f32.mrf.mxu0 }
 0x105   :  { %v265_v1 = vadd.f32 %v264_v48, %v70_v62 }
 0x106   :  { %v268_v49 = vpop.f32.mrf.mxu0 }
 0x107   :  { %v269_v0 = vadd.f32 %v268_v49, %v75_v54 }
 0x108   :  { %v270_v50 = vpop.f32.mrf.mxu0 }
 0x109   :  { %v271_v63 = vadd.f32 %v270_v50, %v75_v54 }
 0x10a   :  { %v274_v52 = vpop.f32.mrf.mxu0 }
 0x10b   :  { %v275_v61 = vadd.f32 %v274_v52, %v80_v56 }
 0x10c   :  { %v276_v53 = vpop.f32.mrf.mxu0 }
 0x10d   :  { %v277_v59 = vadd.f32 %v276_v53, %v80_v56 }
 0x10e   :  { %v280_v55 = vpop.f32.mrf.mxu0 }
 0x10f   :  { %v281_v57 = vadd.f32 %v280_v55, %v85_v51 }
 0x110   :  { %v282_v58 = vpop.f32.mrf.mxu0 }
 0x111   :  { %v283_v60 = vadd.f32 %v282_v58, %v85_v51 }
 0x113   :  { %614 = vtanh.f32 %v283_v60 }
 0x114   :  { %616 = vtanh.f32 %v281_v57 }
 0x115   :  { %618 = vtanh.f32 %v277_v59 }
 0x116   :  { %620 = vtanh.f32 %v275_v61 }
 0x117   :  { %622 = vtanh.f32 %v271_v63 }
 0x118   :  { %624 = vtanh.f32 %v269_v0 }
 0x119   :  { %626 = vtanh.f32 %v265_v1 }
 0x11a   :  { %628 = vtanh.f32 %v263_v2 }
 0x120   :  { %v615_v3 = vpop.eup %614 }
 0x121   :  { %v617_v4 = vpop.eup %616  ;;  %358 = vmatprep.subr.mxu1 %v615_v3 }
 0x122   :  { %v619_v5 = vpop.eup %618  ;;  %359 = vmatpush1.msra.mxu1 %v617_v4 }
 0x123   :  { %v621_v6 = vpop.eup %620  ;;  %360 = vmatprep.subr.mxu1 %v619_v5 }
 0x124   :  { %v623_v7 = vpop.eup %622  ;;  %361 = vmatpush1.msra.mxu1 %v621_v6 }
 0x125   :  { %v625_v8 = vpop.eup %624  ;;  %362 = vmatprep.subr.mxu1 %v623_v7 }
 0x126   :  { %v627_v9 = vpop.eup %626  ;;  %363 = vmatpush1.msra.mxu1 %v625_v8 }
 0x127   :  { %v629_v11 = vpop.eup %628  ;;  %364 = vmatprep.subr.mxu1 %v627_v9 }
 0x128   :  { %365 = vmatpush1.msra.mxu1 %v629_v11 }
 0x129   :  { %564 = vmatmul.mubr.msk.f32.vlgmr.msra.gmra.mxu1 %vm321_vm1, %v293_v10 }
 0x12a   :  { %404 = vmatprep.mubr.f32.mxu1 %v669_v46 }
 0x12d   :  { %565 = vmatmul.mubr.msk.f32.gmra.mxu1 %vm321_vm1, %v294_v12 }
 0x12e   :  { %410 = vmatprep.mubr.f32.mxu1 %v669_v46 }
 0x131   :  { %566 = vmatmul.mubr.msk.f32.gmra.mxu1 %vm321_vm1, %v295_v13 }
 0x132   :  { %416 = vmatprep.mubr.f32.mxu1 %v669_v46 }
 0x135   :  { %567 = vmatmul.mubr.msk.f32.gmra.mxu1 %vm321_vm1, %v296_v14 }
 0x136   :  { %505 = vmatprep.mubr.f32.mxu1 %v669_v46 }
 0x1e9   :  { %v400_v15 = vpop.f32.mrf.mxu1 }
 0x1ea   :  { %v401_v34 = vadd.f32 %v400_v15, %v304_v31 }
 0x1eb   :  { %v402_v16 = vpop.f32.mrf.mxu1 }
 0x1ec   :  { %v403_v33 = vadd.f32 %v402_v16, %v304_v31 }
 0x1ed   :  { %v406_v17 = vpop.f32.mrf.mxu1 }
 0x1ee   :  { %v407_v32 = vadd.f32 %v406_v17, %v309_v28 }
 0x1ef   :  { %v408_v18 = vpop.f32.mrf.mxu1 }
 0x1f0   :  { %v409_v30 = vadd.f32 %v408_v18, %v309_v28 }
 0x1f1   :  { %v412_v19 = vpop.f32.mrf.mxu1 }
 0x1f2   :  { %v413_v29 = vadd.f32 %v412_v19, %v314_v22 }
 0x1f3   :  { %v414_v21 = vpop.f32.mrf.mxu1 }
 0x1f4   :  { %v415_v26 = vadd.f32 %v414_v21, %v314_v22 }
 0x1f5   :  { %v418_v23 = vpop.f32.mrf.mxu1 }
 0x1f6   :  { %v419_v24 = vadd.f32 %v418_v23, %v319_v20 }
 0x1f7   :  { %v420_v25 = vpop.f32.mrf.mxu1 }
 0x1f8   :  { %v421_v27 = vadd.f32 %v420_v25, %v319_v20 }
 0x1fa   :  { %630 = vtanh.f32 %v421_v27 }
 0x1fb   :  { %632 = vtanh.f32 %v419_v24 }
 0x1fc   :  { %634 = vtanh.f32 %v415_v26 }
 0x1fd   :  { %636 = vtanh.f32 %v413_v29 }
 0x1fe   :  { %638 = vtanh.f32 %v409_v30 }
 0x1ff   :  { %640 = vtanh.f32 %v407_v32 }
 0x200   :  { %642 = vtanh.f32 %v403_v33 }
 0x201   :  { %644 = vtanh.f32 %v401_v34 }
 0x207   :  { %v631_v35 = vpop.eup %630 }
 0x208   :  { %v633_v36 = vpop.eup %632  ;;  %465 = vmatprep.subr.mxu1 %v631_v35 }
 0x209   :  { %v635_v37 = vpop.eup %634  ;;  %466 = vmatpush1.msra.mxu1 %v633_v36 }
 0x20a   :  { %v637_v38 = vpop.eup %636  ;;  %467 = vmatprep.subr.mxu1 %v635_v37 }
 0x20b   :  { %v639_v39 = vpop.eup %638  ;;  %468 = vmatpush1.msra.mxu1 %v637_v38 }
 0x20c   :  { %v641_v40 = vpop.eup %640  ;;  %469 = vmatprep.subr.mxu1 %v639_v39 }
 0x20d   :  { %v643_v41 = vpop.eup %642  ;;  %470 = vmatpush1.msra.mxu1 %v641_v40 }
 0x20e   :  { %v645_v43 = vpop.eup %644  ;;  %471 = vmatprep.subr.mxu1 %v643_v41 }
 0x20f   :  { %472 = vmatpush1.msra.mxu1 %v645_v43 }
 0x210   :  { %568 = vmatmul.mubr.msk.f32.vlgmr.msra.gmra.mxu1 %vm321_vm1, %v431_v42 }
 0x2d0   :  { %v507_v45 = vpop.f32.mrf.mxu1 }
 0x2d1   :  { %v508_v46 = vadd.f32 %v507_v45, %v436_v44 }
 0x2d2   :  { %v509_v47 = vpop.f32.mrf.mxu1 }
 0x2d3   :  { %512 = vst [vmem:[#allocation2] sm:$0xff] %v508_v46  ;;  %v510_v48 = vadd.f32 %v509_v47, %v436_v44 }
 0x2d5   :  { %513 = vst [vmem:[#allocation2 + $0x8] sm:$0xff] %v510_v48 }
 0x2d6   :  { %657 = shalt.err (!%p654_p4)
}
 0x2d7   :  { %523 = dma.vmem_to_hbm [thread:$0]  %s521_s23, 256, %s920_s7, [#allocation3]  }
 0x2d8   :  { %666 = dma.done.wait [#allocation3], 256  }
 0x2d9   :  { %667 = vsyncadd [#allocation3], 4294967040 }
 0x2da   :  { %527 = vsyncpa [#allocation3], 1 }

</bundles_post_ra>
